<compile_context>
chip_gen: v7x
topology: tpu7x:2x2x1
jax: 0.10.0
libtpu: 0.0.40
codegen_flags: <defaults>
</compile_context>

<pallas_src>
import jax
import jax.numpy as jnp
from jax.experimental import pallas as pl
from jax.experimental.pallas import tpu as pltpu


# ---------------------------------------------------------------------------
# Tile sizing
# ---------------------------------------------------------------------------
def _round_up(x, m):
    return (x + m - 1) // m * m


def _pick_rows_per_tile(seq, dim2, tile_budget_bytes=2 << 20, elt_bytes=2):
    """Rows of the [seq, seq] score matrix handled per grid step.

    Sized so one bf16 M tile is ~2 MiB: with double buffering that is well
    inside the default scoped-VMEM limit on v5e/v6e and leaves ample headroom
    on v7x (64 MiB physical VMEM), while giving the pipeliner enough steps to
    keep the HBM DMA (the critical resource) busy.  dim2 is budgeted at its
    lane-padded width (multiples of 128).
    """
    dim2_padded = _round_up(dim2, 128)
    cap = max(1, tile_budget_bytes // (seq * dim2_padded * elt_bytes))
    if cap >= seq:
        return seq                      # whole [seq, seq] slab fits the budget
    for r in range(min(cap, seq), 0, -1):
        # need r | seq (even grid) and r % 8 == 0 (sublane-aligned blocks)
        if seq % r == 0 and r % 8 == 0:
            return r
    return seq                          # fallback: full dims are always legal


# ---------------------------------------------------------------------------
# Kernel: one (batch, row-tile) step of  S = Linear2(ReLU(Linear1(M))) + bias
# ---------------------------------------------------------------------------
def span_scoring_kernel(m_ref, bias_ref, w1_ref, b1_ref, w2_ref, s_ref):
    # m_ref:    [rows*seq, dim2]  bf16   span-pair features (flattened rows)
    # bias_ref: [rows, seq]       f32    b2 - 10000*(1 - mask_matrix), precomputed
    # w1_ref:   [dim2, dim2]      bf16
    # b1_ref:   [1, dim2]         f32
    # w2_ref:   [1, dim2]         f32    (second Linear has out_features == 1)
    # s_ref:    [rows, seq]       f32
    rows, seq = s_ref.shape

    # Linear1 on the MXU: bf16 x bf16 -> f32 accumulate; bias + ReLU in f32.
    h = jnp.dot(m_ref[...], w1_ref[...], preferred_element_type=jnp.float32)
    h = jnp.maximum(h + b1_ref[...], 0.0)

    # Linear2 (N == 1) as multiply + lane reduce: result comes out directly as
    # a [rows, seq] tile (lane-dense whenever seq >= 128) with no relayout.
    h3 = h.reshape(rows, seq, h.shape[-1])
    s = jnp.sum(h3 * w2_ref[...][None], axis=-1)

    s_ref[...] = s + bias_ref[...]


# ---------------------------------------------------------------------------
# Wrapper
# ---------------------------------------------------------------------------
def span_scoring_forward(M, H_cls, masks, params, *, tile_budget_bytes=2 << 20):
    """Pallas implementation of the SpanQualifier scoring forward.

    M:      [bs, seq, seq, dim2] float32 (cast to bf16 for the kernel)
    H_cls:  [bs, dim1]           float32
    masks:  [bs, seq]            float32
    Returns (S [bs, seq, seq], qs [bs, 1]).
    """
    bs, seq, _, dim2 = M.shape
    n_pairs = seq * seq

    # bf16 halves HBM traffic on the dominant operand; MXU is natively bf16.
    M_flat = M.reshape(bs, n_pairs, dim2).astype(jnp.bfloat16)
    w1 = params["scoring_w1"].astype(jnp.bfloat16)
    b1 = params["scoring_b1"]                                    # [1, dim2] f32
    w2_row = params["scoring_w2"].reshape(1, dim2)               # [1, dim2] f32
    b2 = params["scoring_b2"]                                    # [1, 1]

    # Additive mask bias (Linear2 bias folded in), precomputed outside the
    # kernel: bias[b, i, j] = b2 - 10000 * (1 - masks[b,i]*masks[b,j]*tri[i,j]).
    tri = params["masks_triangle"][:seq, :seq]
    mask_matrix = masks[:, :, None] * masks[:, None, :] * tri[None]
    bias = (b2[0, 0] - 10000.0 * (1.0 - mask_matrix)).astype(jnp.float32)

    rows = _pick_rows_per_tile(seq, dim2, tile_budget_bytes)
    n_tiles = seq // rows
    rt = rows * seq                                              # flat rows/tile

    S = pl.pallas_call(
        span_scoring_kernel,
        out_shape=jax.ShapeDtypeStruct((bs, seq, seq), jnp.float32),
        grid=(bs, n_tiles),
        in_specs=[
            pl.BlockSpec((None, rt, dim2), lambda b, r: (b, r, 0)),   # M tile
            pl.BlockSpec((None, rows, seq), lambda b, r: (b, r, 0)),  # bias tile
            pl.BlockSpec((dim2, dim2), lambda b, r: (0, 0)),          # w1
            pl.BlockSpec((1, dim2), lambda b, r: (0, 0)),             # b1
            pl.BlockSpec((1, dim2), lambda b, r: (0, 0)),             # w2 row
        ],
        out_specs=pl.BlockSpec((None, rows, seq), lambda b, r: (b, r, 0)),
        compiler_params=pltpu.CompilerParams(
            dimension_semantics=("parallel", "parallel")),
    )(M_flat, bias, w1, b1, w2_row)

    # mlp_cls is a tiny [bs, dim1] MLP: per perf review, a separate pallas_call
    # costs more in launch/DMA overhead than the compute, so keep it in XLA.
    hc = jnp.maximum(H_cls @ params["cls_w1"] + params["cls_b1"][0], 0.0)
    qs = hc @ params["cls_w2"] + params["cls_b2"][0]

    return S, qs


# ---------------------------------------------------------------------------
# Parameter construction (deterministic, synthetic)
# ---------------------------------------------------------------------------
def init_params(key, dim1, dim2, max_len, max_span_gap):
    ks = jax.random.split(key, 8)
    scale = 0.05
    params = {
        # mlp_scoring: Linear(dim2, dim2) -> ReLU -> Linear(dim2, 1)
        "scoring_w1": scale * jax.random.normal(ks[0], (dim2, dim2), jnp.float32),
        "scoring_b1": scale * jax.random.normal(ks[1], (1, dim2), jnp.float32),
        "scoring_w2": scale * jax.random.normal(ks[2], (dim2, 1), jnp.float32),
        "scoring_b2": scale * jax.random.normal(ks[3], (1, 1), jnp.float32),
        # mlp_cls: Linear(dim1, dim1) -> ReLU -> Linear(dim1, 1)
        "cls_w1": scale * jax.random.normal(ks[4], (dim1, dim1), jnp.float32),
        "cls_b1": scale * jax.random.normal(ks[5], (1, dim1), jnp.float32),
        "cls_w2": scale * jax.random.normal(ks[6], (dim1, 1), jnp.float32),
        "cls_b2": scale * jax.random.normal(ks[7], (1, 1), jnp.float32),
    }
    # masks_triangle[i, j] = 1 if i <= j and j - i <= max_span_gap else 0
    ii = jnp.arange(max_len)[:, None]
    jj = jnp.arange(max_len)[None, :]
    params["masks_triangle"] = (
        (ii <= jj) & ((jj - ii) <= max_span_gap)).astype(jnp.float32)
    return params


def reference_forward(M, H_cls, masks, params):
    """Plain-JAX reference mirroring the PyTorch forward (for verification).

    M and w1 are rounded to bf16 (as the kernel consumes them) so the
    comparison isolates kernel correctness from input quantization.
    """
    bs, seq, _, _ = M.shape
    Mq = M.astype(jnp.bfloat16).astype(jnp.float32)
    w1q = params["scoring_w1"].astype(jnp.bfloat16).astype(jnp.float32)
    h = jnp.maximum(Mq @ w1q + params["scoring_b1"][0], 0.0)
    S = (h @ params["scoring_w2"] + params["scoring_b2"][0]).reshape(bs, seq, seq)
    hc = jnp.maximum(H_cls @ params["cls_w1"] + params["cls_b1"][0], 0.0)
    qs = hc @ params["cls_w2"] + params["cls_b2"][0]
    masks_ex = jnp.broadcast_to(masks[:, None, :], (bs, seq, seq))
    masks_ex = masks_ex * jnp.transpose(masks_ex, (0, 2, 1))
    tri = params["masks_triangle"][:seq, :seq][None]
    S = S - 10000.0 * (1.0 - masks_ex * tri)
    return S, qs


# ---------------------------------------------------------------------------
if __name__ == "__main__":
    bs, seq_len = 2, 8
    dim1, dim2 = 32, 128          # dim2 kept a multiple of 128 (lane width)
    max_len, max_span_gap = 16, 4

    key = jax.random.PRNGKey(0)
    k_m, k_h, k_mask, k_p = jax.random.split(key, 4)

    M = jax.random.normal(k_m, (bs, seq_len, seq_len, dim2), jnp.float32)
    H_cls = jax.random.normal(k_h, (bs, dim1), jnp.float32)
    # token-level attention-style masks (0/1 floats), like in the original model
    masks = (jax.random.uniform(k_mask, (bs, seq_len)) > 0.25).astype(jnp.float32)

    params = init_params(k_p, dim1, dim2, max_len, max_span_gap)

    S, qs = span_scoring_forward(M, H_cls, masks, params)
    jax.block_until_ready((S, qs))

    S_ref, qs_ref = reference_forward(M, H_cls, masks, params)
    assert S.shape == (bs, seq_len, seq_len) and qs.shape == (bs, 1)
    assert jnp.allclose(S, S_ref, atol=5e-3, rtol=1e-3), \
        float(jnp.max(jnp.abs(S - S_ref)))
    assert jnp.allclose(qs, qs_ref, atol=1e-4, rtol=1e-4)

    print("KERNEL_OK")
</pallas_src>

<mosaic_0001>
module attributes {stable_mosaic.version = 11 : i64} {
  func.func @span_scoring_kernel(%arg0: i32, %arg1: i32, %arg2: memref<1x64x128xbf16, #tpu.memory_space<vmem>>, %arg3: memref<1x8x8xf32, #tpu.memory_space<vmem>>, %arg4: memref<128x128xbf16, #tpu.memory_space<vmem>>, %arg5: memref<1x128xf32, #tpu.memory_space<vmem>>, %arg6: memref<1x128xf32, #tpu.memory_space<vmem>>, %arg7: memref<1x8x8xf32, #tpu.memory_space<vmem>>) attributes {dimension_semantics = [#tpu.dimension_semantics<parallel>, #tpu.dimension_semantics<parallel>], iteration_bounds = array<i64: 2, 1>, scalar_prefetch = 0 : i64, scratch_operands = 0 : i64, tpu.core_type = #tpu.core_type<tc>, window_params = [{transform_indices = @transform_0, window_bounds = array<i64: 1, 64, 128>}, {transform_indices = @transform_1, window_bounds = array<i64: 1, 8, 8>}, {pipeline_mode = #tpu.pipeline_mode<synchronous>, transform_indices = @transform_2, window_bounds = array<i64: 128, 128>}, {pipeline_mode = #tpu.pipeline_mode<synchronous>, transform_indices = @transform_3, window_bounds = array<i64: 1, 128>}, {pipeline_mode = #tpu.pipeline_mode<synchronous>, transform_indices = @transform_4, window_bounds = array<i64: 1, 128>}, {transform_indices = @transform_5, window_bounds = array<i64: 1, 8, 8>}]} {
    %c0 = arith.constant 0 : index
    %c0_0 = arith.constant 0 : index
    %c0_1 = arith.constant 0 : index
    %0 = vector.load %arg2[%c0, %c0_0, %c0_1] : memref<1x64x128xbf16, #tpu.memory_space<vmem>>, vector<1x64x128xbf16>
    %1 = vector.shape_cast %0 : vector<1x64x128xbf16> to vector<64x128xbf16>
    %c0_2 = arith.constant 0 : index
    %c0_3 = arith.constant 0 : index
    %2 = vector.load %arg4[%c0_2, %c0_3] : memref<128x128xbf16, #tpu.memory_space<vmem>>, vector<128x128xbf16>
    %cst = arith.constant dense<0.000000e+00> : vector<64x128xf32>
    %3 = tpu.matmul %1, %2, %cst {dimension_numbers = #tpu.dot_dimension_numbers<[1], [0], [0], [1], [0, 0, 1, 1], [], []>} : vector<64x128xbf16>, vector<128x128xbf16>, vector<64x128xf32> -> vector<64x128xf32>
    %c0_4 = arith.constant 0 : index
    %c0_5 = arith.constant 0 : index
    %4 = vector.load %arg5[%c0_4, %c0_5] : memref<1x128xf32, #tpu.memory_space<vmem>>, vector<1x128xf32>
    %5 = vector.broadcast %4 : vector<1x128xf32> to vector<64x128xf32>
    %6 = arith.addf %3, %5 : vector<64x128xf32>
    %cst_6 = arith.constant 0.000000e+00 : f32
    %7 = vector.broadcast %cst_6 : f32 to vector<64x128xf32>
    %8 = arith.maximumf %6, %7 : vector<64x128xf32>
    %9 = vector.shape_cast %8 : vector<64x128xf32> to vector<8x8x128xf32>
    %c0_7 = arith.constant 0 : index
    %c0_8 = arith.constant 0 : index
    %10 = vector.load %arg6[%c0_7, %c0_8] : memref<1x128xf32, #tpu.memory_space<vmem>>, vector<1x128xf32>
    %11 = vector.shape_cast %10 : vector<1x128xf32> to vector<1x1x128xf32>
    %12 = vector.broadcast %11 : vector<1x1x128xf32> to vector<8x8x128xf32>
    %13 = arith.mulf %9, %12 : vector<8x8x128xf32>
    %cst_9 = arith.constant dense<0.000000e+00> : vector<8x8xf32>
    %14 = vector.multi_reduction <add>, %13, %cst_9 [2] : vector<8x8x128xf32> to vector<8x8xf32>
    %c0_10 = arith.constant 0 : index
    %c0_11 = arith.constant 0 : index
    %c0_12 = arith.constant 0 : index
    %15 = vector.load %arg3[%c0_10, %c0_11, %c0_12] : memref<1x8x8xf32, #tpu.memory_space<vmem>>, vector<1x8x8xf32>
    %16 = vector.shape_cast %15 : vector<1x8x8xf32> to vector<8x8xf32>
    %17 = arith.addf %14, %16 : vector<8x8xf32>
    %c0_13 = arith.constant 0 : index
    %c0_14 = arith.constant 0 : index
    %c0_15 = arith.constant 0 : index
    %18 = vector.load %arg7[%c0_13, %c0_14, %c0_15] : memref<1x8x8xf32, #tpu.memory_space<vmem>>, vector<1x8x8xf32>
    %19 = vector.shape_cast %18 : vector<1x8x8xf32> to vector<8x8xf32>
    %20 = vector.shape_cast %17 : vector<8x8xf32> to vector<1x8x8xf32>
    tpu.vector_store %arg7[%c0_13, %c0_14, %c0_15], %20 {strides = array<i32>} : memref<1x8x8xf32, #tpu.memory_space<vmem>>, vector<1x8x8xf32>,
    return
  }
  func.func @transform_0(%arg0: i32, %arg1: i32) -> (i32, i32, i32) {
    %c0_i32 = arith.constant 0 : i32
    %c0_i32_0 = arith.constant 0 : i32
    return %arg0, %arg1, %c0_i32 : i32, i32, i32
  }
  func.func @transform_1(%arg0: i32, %arg1: i32) -> (i32, i32, i32) {
    %c0_i32 = arith.constant 0 : i32
    %c0_i32_0 = arith.constant 0 : i32
    return %arg0, %arg1, %c0_i32 : i32, i32, i32
  }
  func.func @transform_2(%arg0: i32, %arg1: i32) -> (i32, i32) {
    %c0_i32 = arith.constant 0 : i32
    %c0_i32_0 = arith.constant 0 : i32
    %c0_i32_1 = arith.constant 0 : i32
    return %c0_i32, %c0_i32_0 : i32, i32
  }
  func.func @transform_3(%arg0: i32, %arg1: i32) -> (i32, i32) {
    %c0_i32 = arith.constant 0 : i32
    %c0_i32_0 = arith.constant 0 : i32
    %c0_i32_1 = arith.constant 0 : i32
    return %c0_i32, %c0_i32_0 : i32, i32
  }
  func.func @transform_4(%arg0: i32, %arg1: i32) -> (i32, i32) {
    %c0_i32 = arith.constant 0 : i32
    %c0_i32_0 = arith.constant 0 : i32
    %c0_i32_1 = arith.constant 0 : i32
    return %c0_i32, %c0_i32_0 : i32, i32
  }
  func.func @transform_5(%arg0: i32, %arg1: i32) -> (i32, i32, i32) {
    %c0_i32 = arith.constant 0 : i32
    %c0_i32_0 = arith.constant 0 : i32
    return %arg0, %arg1, %c0_i32 : i32, i32, i32
  }
}

</mosaic_0001>

<bundles_post_ra>
// kernel: tpu_custom_call.1
= control target key start
LH: loop header
LB: loop body
LE: loop exit
PB: predicated region body
PF: predicated region fallthrough
CT: control target
= control target key end

     0   :  { %s1510_s0 = inlined_call_operand.hbm [shape: bf16[2,64,128], index: 0, kind: input, shape index: {}]   ;;  %s1511_s1 = inlined_call_operand.hbm [shape: f32[2,8,8], index: 1, kind: input, shape index: {}]   ;;  %s1512_s2 = inlined_call_operand.hbm [shape: bf16[128,128], index: 2, kind: input, shape index: {}]   ;;  %s1513_s3 = inlined_call_operand.vmem [shape: f32[1,128], index: 3, kind: input, shape index: {}]   ;;  %s1514_s4 = inlined_call_operand.vmem [shape: f32[1,128], index: 4, kind: input, shape index: {}]   ;;  %s1515_s5 = inlined_call_operand.hbm [shape: f32[2,8,8], index: 5, kind: output, shape index: {}]  }
   0x1   :  { %1524 = sst [smem:[#allocation16_spill]] %s1510_s0 }
   0x2   :  { %1525 = sst [smem:[#allocation17_spill]] %s1512_s2 }
   0x3   :  { %10 = vsyncpa [#allocation3], 0 }
   0x4   :  { %12 = vsyncpa [#allocation3 + $0x1], 0 }
   0x5   :  { %13 = vsyncpa [#allocation6], 0 }
   0x6   :  { %15 = vsyncpa [#allocation6 + $0x1], 0 }
   0x7   :  { %16 = vsyncpa [#allocation4], 0 }
   0x8   :  { %18 = vsyncpa [#allocation4 + $0x1], 0  ;;  %s1209_s18 = smov 0   ;;  %s1211_s19 = smov 0  }
   0x9   :  { %s1213_s20 = smov 0   ;;  %s1215_s21 = smov 0  }
   0xa   :  { %s1217_s22 = smov 0   ;;  %s1219_s23 = smov 0  }
   0xb LB: > { %1526 = sst [smem:[#allocation13_spill]] %s1158_s20  ;;  %s1240_s24 = sadd.s32 4294967295, %s1170_s23   ;;  %s1170_s23 = sphi %s1219_s23, %s24_s23   ;;  %s1166_s22 = sphi %s1217_s22, %s1555_s22   ;;  %s1162_s21 = sphi %s1215_s21, %s1554_s21   ;;  %s1158_s20 = sphi %s1213_s20, %s1550_s20   ;;  %s1154_s19 = sphi %s1211_s19, %s1553_s19   ;;  %s1150_s18 = sphi %s1209_s18, %s1552_s18  }
   0xc   : > { %s812_s25 = sadd.s32 4294967294, %s1170_s23   ;;  %p58_p0 = scmp.ne.s32.totalorder %s1154_s19, %s1150_s18 }
   0xd   : > { %p1516_p1 = scmp.eq.s32.totalorder %s1240_s24, 0  ;;  %p181_p3 = scmp.eq.s32.totalorder %s812_s25, 1 }
   0xe   : > { %p813_p5 = scmp.ge.s32.totalorder %s1170_s23, 1  ;;  %p188_p7 = scmp.lt.s32.totalorder %s1170_s23, 3 }
   0xf   : > { %p1249_p4 = por %p1516_p1, %p58_p0  ;;  %p1254_p6 = por %p181_p3, %p58_p0 }
  0x10   : > { %p1259_p8 = pnand %p813_p5, %p188_p7  ;;  %s1172_s29 = smov [#allocation7]  }
  0x11   : > { %s1527_s26 = scalar_select %p1249_p4, 1, 0 }
  0x12   : > { %s1528_s27 = scalar_select %p1254_p6, 1, 0 }
  0x13   : > { %s1529_s28 = scalar_select %p1259_p8, 1, 0 }
  0x14   : > { %s200_s30 = sshll.u32 %s1172_s29, 4  ;;  %p907_p9 = pneg %p1259_p8  ;;  %s201_s30 = int_to_ptr.vmem [resolvable:$true] %s200_s30 }
  0x15   : > { %s36_s7 = sadd.s32 1, %s1166_s22  ;;  %s1531_s2 = sld [smem:[#allocation17_spill]] }
  0x16   : > { %p1268_p11 = pnand %p907_p9, %p1516_p1 }
  0x18   : > { %p994_p13 = pneg %p1268_p11 }
  0x1b   : > { %s992_s10 = scalar_lea.hbm %s1531_s2, 1024 }
  0x1c   : > { %p993_p12 = scmp.ne.s32.totalorder %s1531_s2, %s992_s10  ;;  %p999_p5 = scmp.lt.u32.totalorder %s992_s10, %s1531_s2 }
  0x1e   : > { %p995_p0 = pnand %p994_p13, %p993_p12 }
  0x20   : > { %p996_p3 = pneg %p995_p0 }
  0x22   : > { %p1001_p7 = pnand %p999_p5, %p996_p3 }
  0x24   : > { %1004 = shalt.err (!%p1001_p7)
}
  0x25   : > { %s1005_s15 = scalar_lea.vmem %s201_s30, 1024  ;;  %p1013_p2 = scmp.lt.s32.totalorder %s201_s30, %s201_s30 }
  0x26   : > { %p1006_p9 = scmp.ne.s32.totalorder %s201_s30, %s1005_s15  ;;  %p1014_p6 = scmp.lt.s32.totalorder %s1005_s15, %s1005_s15 }
  0x28   : > { %p1008_p10 = pnand %p1006_p9, %p994_p13  ;;  %p1015_p4 = por %p1014_p6, %p1013_p2 }
  0x2a   : > { %p1009_p1 = pneg %p1008_p10 }
  0x2c   : > { %p1016_p8 = pnand %p1015_p4, %p1009_p1 }
  0x2e   : > { %1019 = shalt.err (!%p1016_p8)
}
  0x2f   : > { %s1519_s16 = smov 64   ;;  %s1520_s17 = smov 4  }
  0x30   : > { %910 = dma.hbm_to_vmem [thread:$0]  (!%p1268_p11), %s1531_s2, 1024, %s201_s30, [#allocation6], %s1519_s16, %s1519_s16, %s1520_s17  }
  0x31   : > { %p38_p1 = scmp.ge.s32.totalorder %s36_s7, 2  ;;  %s45_s8 = sadd.s32 1, %s1158_s20 }
  0x32   : > { %p52_p2 = scmp.ne.s32.totalorder %s1158_s20, %s1154_s19  ;;  %p53_p4 = scmp.eq.s32.totalorder %s1170_s23, 0 }
  0x33   : > { %s1557_s7 = smov (%p38_p1, %s36_s7), 0  ;;  %p1534_p8 = scmp.eq.s32.totalorder %s1240_s24, 1 }
  0x34   : > { %1532 = sst [smem:[#allocation14_spill]] %s1557_s7  ;;  %p1298_p6 = por %p53_p4, %p52_p2 }
  0x35   : > { %p1304_p10 = por %p1534_p8, %p52_p2  ;;  %s40_s10 = ssub.s32 %s1166_s22, %s1557_s7 }
  0x36   : > { %p923_p11 = scmp.lt.s32.totalorder %s1170_s23, 2  ;;  %p43_p12 = scmp.eq.s32.totalorder %s40_s10, 0 }
  0x37   : > { %s1535_s6 = scalar_select %p1304_p10, 1, 0 }
  0x38   : > { %s1312_s30 = sand.u32 1, %s1158_s20   ;;  %s844_s13 = sshll.u32 %s1166_s22, 9 }
  0x39   : > { %s816_s11 = sshll.u32 %s1312_s30, 5  ;;  %s1537_s0 = sld [smem:[#allocation16_spill]] }
  0x3a   : > { %s1316_s12 = scalar_select %p43_p12, %s1158_s20, %s45_s8  }
  0x3b   : > { %s224_s29 = scalar_lea.vmem [#allocation2], %s816_s11  ;;  %p1328_p13 = pnand %p923_p11, %p1298_p6 }
  0x3c   : > { %1536 = sst [smem:[#allocation15_spill]] %s1316_s12  ;;  %s233_s10 = sshll.u32 %s224_s29, 4  ;;  %s1324_s10 = int_to_ptr.vmem [resolvable:$true] %s233_s10 }
  0x3d   : > { %s819_s17 = sshll.u32 %s1312_s30, 3  ;;  %s221_s14 = scalar_lea.sflag [#allocation3], %s1312_s30 }
  0x3e   : > { %p1022_p3 = pneg %p1328_p13 }
  0x3f   : > { %s1322_s25 = scalar_lea.hbm %s1537_s0, %s844_s13  ;;  %s1025_s9 = scalar_lea.hbm %s1537_s0, 1024 }
  0x40   : > { %s1020_s13 = scalar_lea.hbm %s1322_s25, 512  ;;  %p1026_p9 = scmp.lt.u32.totalorder %s1322_s25, %s1537_s0 }
  0x41   : > { %p1021_p0 = scmp.ne.s32.totalorder %s1322_s25, %s1020_s13  ;;  %p1027_p1 = scmp.lt.u32.totalorder %s1025_s9, %s1020_s13 }
  0x42   : > { %p1029_p4 = scmp.lt.u32.totalorder %s1020_s13, %s1322_s25 }
  0x43   : > { %p1023_p5 = pnand %p1022_p3, %p1021_p0  ;;  %p1028_p2 = por %p1027_p1, %p1026_p9 }
  0x45   : > { %p1024_p7 = pneg %p1023_p5  ;;  %p1030_p6 = por %p1029_p4, %p1028_p2 }
  0x47   : > { %p1031_p8 = pnand %p1030_p6, %p1024_p7 }
  0x49   : > { %1034 = shalt.err (!%p1031_p8)
}
  0x4a   : > { %s1035_s8 = scalar_lea.vmem %s1324_s10, 512  ;;  %s1175_s11 = smov [#allocation2]  }
  0x4b   : > { %p1036_p11 = scmp.ne.s32.totalorder %s1324_s10, %s1035_s8  ;;  %s1040_s15 = sshll.u32 %s1175_s11, 4  ;;  %s1041_s15 = int_to_ptr.vmem [resolvable:$false] %s1040_s15 }
  0x4c   : > { %s1042_s2 = scalar_lea.vmem %s1041_s15, 1024  ;;  %p1043_p5 = scmp.lt.s32.totalorder %s1324_s10, %s1041_s15 }
  0x4d   : > { %p1038_p12 = pnand %p1036_p11, %p1022_p3  ;;  %p1044_p9 = scmp.lt.s32.totalorder %s1042_s2, %s1035_s8 }
  0x4f   : > { %p1039_p0 = pneg %p1038_p12  ;;  %p1045_p1 = por %p1044_p9, %p1043_p5 }
  0x51   : > { %p1046_p2 = pnand %p1045_p1, %p1039_p0 }
  0x53   : > { %1049 = shalt.err (!%p1046_p2)
}
  0x54   : > { %s1539_s13 = smov 4   ;;  %s1540_s9 = smov 64  }
  0x55   : > { %914 = dma.hbm_to_vmem [thread:$0]  (!%p1328_p13), %s1322_s25, 512, %s1324_s10, %s221_s14, %s1540_s9, %s1540_s9, %s1539_s13  }
  0x56   : > { %s820_s29 = sshll.u32 %s1166_s22, 7  ;;  %s247_s2 = scalar_lea.vmem [#allocation5], %s819_s17 }
  0x57   : > { %s1369_s15 = scalar_lea.hbm %s1511_s1, %s820_s29  ;;  %s255_s0 = sshll.u32 %s247_s2, 4  ;;  %s256_s0 = int_to_ptr.vmem [resolvable:$true] %s255_s0 }
  0x58   : > { %s1541_s7 = sand.u32 1, %s1170_s23   ;;  %s1050_s20 = scalar_lea.hbm %s1369_s15, 128 }
  0x59   : > { %s244_s12 = scalar_lea.sflag [#allocation6], %s1541_s7  ;;  %p1051_p7 = scmp.ne.s32.totalorder %s1369_s15, %s1050_s20 }
  0x5a   : > { %s1055_s14 = scalar_lea.hbm %s1511_s1, 256  ;;  %p1056_p8 = scmp.lt.u32.totalorder %s1369_s15, %s1511_s1 }
  0x5b   : > { %p1053_p4 = pnand %p1051_p7, %p1022_p3  ;;  %p1057_p11 = scmp.lt.u32.totalorder %s1055_s14, %s1050_s20 }
  0x5c   : > { %p1059_p0 = scmp.lt.u32.totalorder %s1050_s20, %s1369_s15 }
  0x5d   : > { %p1054_p6 = pneg %p1053_p4  ;;  %p1058_p12 = por %p1057_p11, %p1056_p8 }
  0x5f   : > { %p1060_p5 = por %p1059_p0, %p1058_p12 }
  0x61   : > { %p1061_p9 = pnand %p1060_p5, %p1054_p6 }
  0x63   : > { %1064 = shalt.err (!%p1061_p9)
}
  0x64   : > { %s1065_s7 = scalar_lea.vmem %s256_s0, 128  ;;  %s1176_s17 = smov [#allocation5]  }
  0x65   : > { %p1066_p1 = scmp.ne.s32.totalorder %s256_s0, %s1065_s7  ;;  %s1070_s9 = sshll.u32 %s1176_s17, 4  ;;  %s1071_s9 = int_to_ptr.vmem [resolvable:$false] %s1070_s9 }
  0x66   : > { %s1072_s29 = scalar_lea.vmem %s1071_s9, 256  ;;  %p1073_p4 = scmp.lt.s32.totalorder %s256_s0, %s1071_s9 }
  0x67   : > { %p1068_p2 = pnand %p1066_p1, %p1022_p3  ;;  %p1074_p10 = scmp.lt.s32.totalorder %s1072_s29, %s1065_s7 }
  0x69   : > { %p1069_p7 = pneg %p1068_p2  ;;  %p1075_p8 = por %p1074_p10, %p1073_p4 }
  0x6b   : > { %p1076_p11 = pnand %p1075_p8, %p1069_p7 }
  0x6d   : > { %1079 = shalt.err (!%p1076_p11)
}
  0x6e   : > { %917 = dma.hbm_to_vmem [thread:$0]  (!%p1328_p13), %s1369_s15, 128, %s256_s0, %s244_s12  }
  0x6f   : > { %p1542_p6 = scmp.ne.s32.totalorder %s1529_s28, 0 }
  0x70   : > { %s1397_s20 = sand.u32 (!%p1542_p6), 1, %s1154_s19   ;;  %p1543_p10 = scmp.ne.s32.totalorder (!%p1542_p6), %s1527_s26, 0 }
  0x71   : > { %264 = sbr.rel (%p1542_p6) target bundleno = 688 (0x2b0), region = 40  ;;  %s822_s11 = sshll.u32 (!%p1542_p6), %s1397_s20, 5 }
  0x72   : > { %s267_s8 = scalar_lea.sflag (!%p1542_p6), [#allocation3], %s1397_s20  ;;  %s1401_s2 = scalar_lea.vmem (!%p1542_p6), [#allocation2], %s822_s11 }
  0x78   : > { %1133 = dma.done.wait (%p1543_p10), %s267_s8, 512  }
  0x79   : > { %1135 = vsyncadd (%p1543_p10), %s267_s8, 4294966784  ;;  %s275_s0 = sand.u32 1, %s1240_s24   ;;  %s823_s28 = sshll.u32 %s1397_s20, 3 }
  0x7a   : > { %s276_s16 = scalar_lea.sflag [#allocation6], %s275_s0  ;;  %s1411_s12 = scalar_lea.vmem [#allocation5], %s823_s28 }
  0x7b   : > { %1137 = dma.done.wait (%p1543_p10), %s276_s16, 128  }
  0x7c   : > { %1139 = vsyncadd (%p1543_p10), %s276_s16, 4294967168  ;;  %p1544_p13 = scmp.eq.s32.totalorder %s1240_s24, 0 }
  0x7e   : > { %1141 = dma.done.wait (%p1544_p13), [#allocation6], 1024   ;;  %p1545_p3 = pmov %p1544_p13 }
  0x7f   : > { %v980_v0 = vld [vmem:[#allocation7] sm:$0xff]   ;;  %v981_v1 = vld [vmem:[#allocation7 + $0x8] sm:$0xff]   ;;  %v526_v2 = vlaneseq  ;;  %v982_v3 = vld [vmem:[#allocation7 + $0x10] sm:$0xff]   ;;  %v1177_v61 = vmov 0   ;;  %vm664_vm0 = vcmask 1041409   ;;  %vm666_vm1 = vcmask 1042434  }
  0x80   : > { %1143 = vsyncadd (%p1545_p3), [#allocation6], 4294966272  ;;  %857 = vmatprep.subr.bf16.mxu0 %v980_v0  ;;  %881 = vmatprep.subr.bf16.mxu1 %v980_v0  ;;  %v983_v5 = vld [vmem:[#allocation7 + $0x18] sm:$0xff]   ;;  %v988_v6 = vld [vmem:[%s1401_s2] sm:$0xff]   ;;  %vm668_vm2 = vcmask 1043459   ;;  %vm670_vm3 = vcmask 1044484  }
  0x81   : > { %858 = vmatpush3.bf16.msra.mxu0 %v980_v0  ;;  %889 = vmatpush3.bf16.msra.mxu1 %v980_v0  ;;  %v1422_v4 = vshrl.u32 %v526_v2, 7  ;;  %v989_v7 = vld [vmem:[%s1401_s2 + $0x10] sm:$0xff]   ;;  %v1429_v11 = vld [vmem:[%s1411_s12] sm:$0xff]  ;;  %v985_v16 = vld [vmem:[#allocation7 + $0x28] sm:$0xff]   ;;  %vm672_vm4 = vcmask 1045509   ;;  %vm674_vm5 = vcmask 1046534  }
  0x82   : > { %859 = vmatprep.subr.bf16.mxu0 %v981_v1  ;;  %882 = vmatprep.subr.bf16.mxu1 %v981_v1  ;;  %v984_v10 = vld [vmem:[#allocation7 + $0x20] sm:$0xff]   ;;  %v986_v20 = vld [vmem:[#allocation7 + $0x30] sm:$0xff]   ;;  %v987_v23 = vld [vmem:[#allocation7 + $0x38] sm:$0xff]   ;;  %s841_s10 = sshll.u32 %s1162_s21, 7  ;;  %s314_s14 = scalar_lea.vmem [#allocation8], %s823_s28  ;;  %vm676_vm6 = vcmask 1047559  }
  0x83   : > { %v535_v8 = vsub.s32 1, %v1422_v4  ;;  %873 = vmatprep.mubr.bf16.mxu0 %v988_v6  ;;  %v528_v9 = vsub.s32 0, %v1422_v4  ;;  %877 = vmatprep.mubr.bf16.mxu1 %v989_v7  ;;  %v542_v13 = vsub.s32 2, %v1422_v4  ;;  %v556_v14 = vsub.s32 4, %v1422_v4  ;;  %v990_v25 = vld [vmem:[%s1401_s2 + $0x8] sm:$0xff]   ;;  %v991_v26 = vld [vmem:[%s1401_s2 + $0x18] sm:$0xff]   ;;  %s1461_s17 = scalar_lea.hbm %s1515_s5, %s841_s10 }
  0x84   : > { %v549_v18 = vsub.s32 3, %v1422_v4  ;;  %v563_v22 = vsub.s32 5, %v1422_v4  ;;  %v826_v27 = vld [vmem:[%s1513_s3] ss:$0 sm:$0xff]  ;;  %978 = vset.pattern.permute.xlu1 %v1177_v61  ;;  %979 = vset.pattern.permute.xlu0 %v1177_v61  ;;  %v577_v62 = vsub.s32 7, %v1422_v4  ;;  %v570_v0 = vsub.s32 6, %v1422_v4 }
  0x85   : > { %860 = vmatpush3.bf16.msra.mxu0 %v981_v1  ;;  %890 = vmatpush3.bf16.msra.mxu1 %v981_v1  ;;  %v536_v12 = vrot.slane %v1429_v11, %v535_v8  ;;  %v529_v15 = vrot.slane %v1429_v11, %v528_v9  ;;  %v543_v17 = vrot.slane %v1429_v11, %v542_v13  ;;  %v839_v37 = vld [vmem:[%s1514_s4] ss:$0 sm:$0xff]  ;;  %s696_s30 = sshll.u32 %s314_s14, 4  ;;  %vm679_vm7 = vcmask 64512   ;;  %s682_s21 = scalar_lea.sflag [#allocation4], %s1397_s20  ;;  %s1463_s30 = int_to_ptr.vmem [resolvable:$true] %s696_s30 }
  0x86   : > { %861 = vmatprep.subr.bf16.mxu0 %v982_v3  ;;  %883 = vmatprep.subr.bf16.mxu1 %v982_v3  ;;  %v557_v19 = vrot.slane %v1429_v11, %v556_v14  ;;  %v550_v21 = vrot.slane %v1429_v11, %v549_v18  ;;  %v564_v24 = vrot.slane %v1429_v11, %v563_v22  ;;  %s1080_s9 = scalar_lea.vmem %s1463_s30, 128  ;;  %p1546_p0 = scmp.ne.s32.totalorder %s1535_s6, 0 }
  0x87   : > { %538 = vbcast.lane.b32.xlu1 %v536_v12, 256  ;;  %531 = vbcast.lane.b32.xlu0 %v529_v15, 256  ;;  %v578_v63 = vrot.slane %v1429_v11, %v577_v62  ;;  %v571_v1 = vrot.slane %v1429_v11, %v570_v0  ;;  %p1081_p12 = scmp.ne.s32.totalorder %s1463_s30, %s1080_s9  ;;  %s1178_s29 = smov [#allocation8]  }
  0x88   : > { %s1084_s11 = sshll.u32 %s1178_s29, 4  ;;  %s1085_s11 = int_to_ptr.vmem [resolvable:$false] %s1084_s11 }
  0x89   : > { %862 = vmatpush3.bf16.msra.mxu0 %v982_v3  ;;  %891 = vmatpush3.bf16.msra.mxu1 %v982_v3  ;;  %p1082_p5 = pnand %p1081_p12, %p1546_p0  ;;  %s1086_s8 = scalar_lea.vmem %s1085_s11, 256 }
  0x8a   : > { %863 = vmatprep.subr.bf16.mxu0 %v983_v5  ;;  %884 = vmatprep.subr.bf16.mxu1 %v983_v5  ;;  %p1087_p1 = scmp.lt.s32.totalorder %s1463_s30, %s1085_s11  ;;  %p1088_p2 = scmp.lt.s32.totalorder %s1086_s8, %s1080_s9 }
  0x8b   : > { %545 = vbcast.lane.b32.xlu1 %v543_v17, 256  ;;  %559 = vbcast.lane.b32.xlu0 %v557_v19, 256  ;;  %p1083_p9 = pneg %p1082_p5 }
  0x8c   : > { %p1089_p7 = por %p1088_p2, %p1087_p1 }
  0x8d   : > { %864 = vmatpush3.bf16.msra.mxu0 %v983_v5  ;;  %892 = vmatpush3.bf16.msra.mxu1 %v983_v5 }
  0x8e   : > { %865 = vmatprep.subr.bf16.mxu0 %v984_v10  ;;  %885 = vmatprep.subr.bf16.mxu1 %v984_v10  ;;  %p1090_p4 = pnand %p1089_p7, %p1083_p9 }
  0x8f   : > { %552 = vbcast.lane.b32.xlu1 %v550_v21, 256 }
  0x91   : > { %866 = vmatpush3.bf16.msra.mxu0 %v984_v10  ;;  %893 = vmatpush3.bf16.msra.mxu1 %v984_v10 }
  0x92   : > { %867 = vmatprep.subr.bf16.mxu0 %v985_v16  ;;  %886 = vmatprep.subr.bf16.mxu1 %v985_v16 }
  0x93   : > { %566 = vbcast.lane.b32.xlu1 %v564_v24, 256 }
  0x95   : > { %868 = vmatpush3.bf16.msra.mxu0 %v985_v16  ;;  %894 = vmatpush3.bf16.msra.mxu1 %v985_v16 }
  0x96   : > { %869 = vmatprep.subr.bf16.mxu0 %v986_v20  ;;  %887 = vmatprep.subr.bf16.mxu1 %v986_v20 }
  0x99   : > { %870 = vmatpush3.bf16.msra.mxu0 %v986_v20  ;;  %895 = vmatpush3.bf16.msra.mxu1 %v986_v20 }
  0x9a   : > { %871 = vmatprep.subr.bf16.mxu0 %v987_v23  ;;  %888 = vmatprep.subr.bf16.mxu1 %v987_v23 }
  0x9d   : > { %872 = vmatpush3.bf16.msra.mxu0 %v987_v23  ;;  %896 = vmatpush3.bf16.msra.mxu1 %v987_v23 }
  0xa0   : > { %874 = vmatmul.mubr.bf16.vlgmr.msra.gmra.mrb[0].mxu0 %v990_v25  ;;  %878 = vmatmul.mubr.bf16.vlgmr.msra.gmra.mrb[0].mxu1 %v991_v26 }
  0xf9   : > { %v539_v3 = vpop.permute.xlu1 %538  ;;  %v532_v7 = vpop.permute.xlu0 %531 }
  0xfd   : > { %v546_v5 = vpop.permute.xlu1 %545  ;;  %v560_v9 = vpop.permute.xlu0 %559 }
 0x101   : > { %v553_v6 = vpop.permute.xlu1 %552 }
 0x105   : > { %v567_v8 = vpop.permute.xlu1 %566 }
 0x173   : > { %v875_v28 = vpop.f32.mrb[0].mxu0  ;;  %v879_v29 = vpop.f32.mrb[0].mxu1 }
 0x174   : > { %v463_v30 = vadd.f32 %v875_v28, %v826_v27  ;;  %v479_v31 = vadd.f32 %v879_v29, %v826_v27  ;;  %v454_v32 = vpop.f32.mrb[1].mxu0  ;;  %v470_v33 = vpop.f32.mrb[1].mxu1  ;;  %v631_v29 = vand.u32 127, %v526_v2 }
 0x175   : > { %v455_v34 = vadd.f32 %v826_v27, %v454_v32  ;;  %v876_v35 = vpop.f32.mrb[2].mxu0  ;;  %v880_v36 = vpop.f32.mrb[2].mxu1  ;;  %v471_v44 = vadd.f32 %v826_v27, %v470_v33 }
 0x176   : > { %v487_v38 = vmax.f32 %v463_v30, 0.0  ;;  %v491_v39 = vmax.f32 %v479_v31, 0.0  ;;  %v466_v40 = vadd.f32 %v876_v35, %v826_v27  ;;  %v457_v41 = vpop.f32.mrb[3].mxu0  ;;  %v473_v42 = vpop.f32.mrb[3].mxu1  ;;  %v482_v46 = vadd.f32 %v880_v36, %v826_v27 }
 0x177   : > { %v485_v43 = vmax.f32 %v455_v34, 0.0  ;;  %v489_v51 = vmax.f32 %v471_v44, 0.0  ;;  %v458_v53 = vadd.f32 %v826_v27, %v457_v41  ;;  %v474_v54 = vadd.f32 %v826_v27, %v473_v42 }
 0x178   : > { %v488_v45 = vmax.f32 %v466_v40, 0.0  ;;  %v506_v47 = vmul.f32 %v839_v37, %v491_v39  ;;  %v502_v48 = vmul.f32 %v839_v37, %v487_v38  ;;  %v492_v52 = vmax.f32 %v482_v46, 0.0 }
 0x179   : > { %v500_v50 = vmul.f32 %v839_v37, %v485_v43  ;;  %v486_v55 = vmax.f32 %v458_v53, 0.0  ;;  %v490_v56 = vmax.f32 %v474_v54, 0.0  ;;  %v504_v58 = vmul.f32 %v839_v37, %v489_v51 }
 0x17a   : > { %520 = vadd.xlane.f32.xlu0 %v506_v47  ;;  %512 = vadd.xlane.f32.xlu1 %v502_v48  ;;  %v503_v49 = vmul.f32 %v839_v37, %v488_v45  ;;  %v507_v57 = vmul.f32 %v839_v37, %v492_v52  ;;  %v634_v32 = vsub.s32 %v631_v29, %v1422_v4 }
 0x17b   : > { %v505_v59 = vmul.f32 %v839_v37, %v490_v56  ;;  %v501_v60 = vmul.f32 %v839_v37, %v486_v55 }
 0x17e   : > { %514 = vadd.xlane.f32.xlu1 %v503_v49  ;;  %508 = vadd.xlane.f32.xlu0 %v500_v50 }
 0x182   : > { %522 = vadd.xlane.f32.xlu1 %v507_v57  ;;  %516 = vadd.xlane.f32.xlu0 %v504_v58 }
 0x186   : > { %518 = vadd.xlane.f32.xlu1 %v505_v59  ;;  %510 = vadd.xlane.f32.xlu0 %v501_v60 }
 0x197   : > { %580 = vbcast.lane.b32.xlu1 %v578_v63, 256 }
 0x19c   : > { %573 = vbcast.lane.b32.xlu0 %v571_v1, 256 }
 0x207   : > { %v521_v10 = vpop.xlane.xlu0 %520  ;;  %v513_v12 = vpop.xlane.xlu1 %512 }
 0x208   : > { %v592_v13 = vadd.f32 %v546_v5, %v513_v12 }
 0x20a   : > { %613 = vperm.xlu1 %978, %v592_v13  }
 0x20b   : > { %v515_v14 = vpop.xlane.xlu1 %514  ;;  %v509_v15 = vpop.xlane.xlu0 %508 }
 0x20c   : > { %v590_v16 = vadd.f32 %v532_v7, %v509_v15  ;;  %v593_v19 = vadd.f32 %v553_v6, %v515_v14 }
 0x20e   : > { %607 = vperm.xlu0 %979, %v590_v16  }
 0x20f   : > { %v523_v17 = vpop.xlane.xlu1 %522  ;;  %v517_v18 = vpop.xlane.xlu0 %516 }
 0x210   : > { %v594_v24 = vadd.f32 %v560_v9, %v517_v18 }
 0x212   : > { %616 = vperm.xlu0 %979, %v593_v19  }
 0x213   : > { %v519_v11 = vpop.xlane.xlu1 %518  ;;  %v511_v20 = vpop.xlane.xlu0 %510 }
 0x214   : > { %v595_v21 = vadd.f32 %v567_v8, %v519_v11  ;;  %v591_v22 = vadd.f32 %v539_v3, %v511_v20 }
 0x216   : > { %622 = vperm.xlu0 %979, %v595_v21   ;;  %610 = vperm.xlu1 %978, %v591_v22  }
 0x217   : > { %v581_v23 = vpop.permute.xlu1 %580  ;;  %v574_v26 = vpop.permute.xlu0 %573 }
 0x218   : > { %v597_v25 = vadd.f32 %v581_v23, %v523_v17  ;;  %v596_v27 = vadd.f32 %v574_v26, %v521_v10 }
 0x21a   : > { %628 = vperm.xlu0 %979, %v597_v25   ;;  %619 = vperm.xlu1 %978, %v594_v24  }
 0x21e   : > { %625 = vperm.xlu1 %978, %v596_v27  }
 0x289   : > { %v614_v30 = vpop.permute.xlu1 %613 }
 0x28a   : > { %v643_v37 = vrot.slane %v614_v30, %v634_v32 }
 0x28d   : > { %v608_v28 = vpop.permute.xlu0 %607 }
 0x28e   : > { %v635_v34 = vrot.slane %v608_v28, %v634_v32 }
 0x291   : > { %v617_v31 = vpop.permute.xlu0 %616 }
 0x292   : > { %v647_v38 = vrot.slane %v617_v31, %v634_v32 }
 0x295   : > { %v611_v33 = vpop.permute.xlu1 %610  ;;  %v623_v36 = vpop.permute.xlu0 %622 }
 0x296   : > { %v639_v35 = vrot.slane %v611_v33, %v634_v32  ;;  %v655_v4 = vrot.slane %v623_v36, %v634_v32 }
 0x298   : > { %v665_v39 = vsel %vm664_vm0, %v639_v35, %v635_v34 }
 0x299   : > { %v667_v40 = vsel %vm666_vm1, %v643_v37, %v665_v39  ;;  %v620_v41 = vpop.permute.xlu1 %619  ;;  %v629_v44 = vpop.permute.xlu0 %628 }
 0x29a   : > { %v651_v2 = vrot.slane %v620_v41, %v634_v32  ;;  %v669_v42 = vsel %vm668_vm2, %v647_v38, %v667_v40  ;;  %v663_v47 = vrot.slane %v629_v44, %v634_v32 }
 0x29c   : > { %v671_v43 = vsel %vm670_vm3, %v651_v2, %v669_v42 }
 0x29d   : > { %v626_v45 = vpop.permute.xlu1 %625  ;;  %v673_v48 = vsel %vm672_vm4, %v655_v4, %v671_v43 }
 0x29e   : > { %v659_v46 = vrot.slane %v626_v45, %v634_v32 }
 0x2a0   : > { %v675_v49 = vsel %vm674_vm5, %v659_v46, %v673_v48 }
 0x2a1   : > { %v677_v50 = vsel %vm676_vm6, %v663_v47, %v675_v49 }
 0x2a2   : > { %680 = vst.msk [vmem:[%s314_s14] sm:$0xff] %vm679_vm7, %v677_v50 }
 0x2a3   : > { %1093 = shalt.err (!%p1090_p4)
}
 0x2a4   : > { %s1094_s20 = scalar_lea.hbm %s1461_s17, 128  ;;  %s1098_s28 = scalar_lea.hbm %s1515_s5, 256 }
 0x2a5   : > { %p1095_p8 = scmp.ne.s32.totalorder %s1461_s17, %s1094_s20  ;;  %p1099_p10 = scmp.lt.u32.totalorder %s1461_s17, %s1515_s5 }
 0x2a6   : > { %p1100_p13 = scmp.lt.u32.totalorder %s1098_s28, %s1094_s20  ;;  %p1102_p12 = scmp.lt.u32.totalorder %s1094_s20, %s1461_s17 }
 0x2a7   : > { %p1096_p11 = pnand %p1095_p8, %p1546_p0 }
 0x2a8   : > { %p1101_p3 = por %p1100_p13, %p1099_p10 }
 0x2a9   : > { %p1097_p6 = pneg %p1096_p11 }
 0x2aa   : > { %p1103_p5 = por %p1102_p12, %p1101_p3 }
 0x2ac   : > { %p1104_p9 = pnand %p1103_p5, %p1097_p6 }
 0x2ae   : > { %1107 = shalt.err (!%p1104_p9)
}
 0x2af   : > { %905 = dma.vmem_to_hbm [thread:$0]  (%p1546_p0), %s1463_s30, 128, %s1461_s17, %s682_s21  }
 0x2b0 PF: > { %s708_s24 = sand.u32 1, %s1150_s18   ;;  %p1547_p1 = scmp.ne.s32.totalorder %s1528_s27, 0 }
 0x2b1   : > { %p1548_p2 = scmp.ge.s32.totalorder %s1170_s23, 2  ;;  %s709_s26 = scalar_lea.sflag [#allocation4], %s708_s24 }
 0x2b3   : > { %p919_p7 = pnand %p1548_p2, %p1547_p1 }
 0x2b5   : > { %1145 = dma.done.wait (!%p919_p7), %s709_s26, 128  }
 0x2b6   : > { %1147 = vsyncadd (!%p919_p7), %s709_s26, 4294967168  ;;  %s24_s23 = sadd.s32 1, %s1170_s23   ;;  %s1549_s15 = sld [smem:[#allocation13_spill]] }
 0x2b7   : > { %p21_p4 = scmp.ge.s32.totalorder %s24_s23, 4   ;;  %s1550_s20 = sld [smem:[#allocation15_spill]] }
 0x2b8   : > { %s1551_s6 = sld [smem:[#allocation14_spill]]  ;;  %s1552_s18 = smov %s1154_s19 }
 0x2b9   : > { %s1554_s21 = smov %s1166_s22  ;;  %23 = sbr.rel (!%p21_p4) target bundleno = 11 (0xb), region = 102 }
 0x2bc   : > { %s1553_s19 = smov %s1549_s15 }
 0x2be   : > { %s1555_s22 = smov %s1551_s6 }
 0x2c0   :  { %714 = vsyncpa [#allocation3], 1 }
 0x2c1   :  { %716 = vsyncpa [#allocation3 + $0x1], 1 }
 0x2c2   :  { %717 = vsyncpa [#allocation6], 1 }
 0x2c3   :  { %719 = vsyncpa [#allocation6 + $0x1], 1 }
 0x2c4   :  { %720 = vsyncpa [#allocation4], 1 }
 0x2c5   :  { %722 = vsyncpa [#allocation4 + $0x1], 1 }

</bundles_post_ra>
